<compile_context>
chip_gen: v7x
topology: tpu7x:2x2x1
jax: 0.10.0
libtpu: 0.0.40
codegen_flags: <defaults>
</compile_context>

<pallas_src>
import functools

import jax
import jax.numpy as jnp
from jax.experimental import pallas as pl
from jax.experimental.pallas import tpu as pltpu


def _round_up(n: int, m: int) -> int:
    return ((n + m - 1) // m) * m


def _cdiv(a: int, b: int) -> int:
    return (a + b - 1) // b


def _vmem_capacity_bytes() -> int:
    try:
        cap = int(pltpu.get_tpu_info().vmem_capacity_bytes)
        if cap > 0:
            return cap
    except Exception:
        pass
    return 64 * 1024 * 1024  # conservative fallback: v7x per-TensorCore VMEM


def _choose_group(bc: int) -> int:
    """Largest g <= 32 dividing bc; backs off if that leaves too few rows."""

    def largest_divisor(cap: int) -> int:
        cap = max(min(cap, bc), 1)
        for cand in range(cap, 0, -1):
            if bc % cand == 0:
                return cand
        return 1

    g = largest_divisor(32)
    if bc // g < 64 and bc >= 64:
        alt = largest_divisor(bc // 64)
        if alt > 1 and bc // alt >= 64:
            g = alt  # keep enough row-parallelism for the grid / megacore
    return g


def _choose_tile_rows(rows: int, l: int, itemsize: int, vmem_limit: int) -> int:
    gran = 8 * max(4 // max(itemsize, 1), 1)  # f32: 8, bf16: 16, int8/fp8: 32
    if rows <= gran:
        return rows  # single block, equal to the full row extent (always legal)

    lpad = _round_up(l, 128)
    in_row = lpad * itemsize                    # one lane-padded input tile row
    f32_row = lpad * 4                          # clamp / pow f32 temporaries
    seg_bytes = _round_up(l, 8) * 128 * 4 * 2   # resident segment matrix (x2 bufs)
    out_row = 2 * 128 * max(itemsize, 4)        # (TR, g<=128) output buffers
    per_row = 2 * in_row + 2 * f32_row + out_row  # dbl-buffered input + temps + out

    budget = vmem_limit - seg_bytes - 2 * 1024 * 1024
    tr_mem = max(budget // per_row, gran)
    tr_target = max((8 * 1024 * 1024) // in_row, gran)  # ~8 MiB input tile
    tr = min(tr_mem, tr_target)

    # Prefer >= 8 grid steps (2 cores x >= 4 pipelined steps) but never shrink
    # the input tile below ~2 MiB for it; always allow >= 2 steps.
    tr_8blocks = _round_up(_cdiv(rows, 8), gran)
    tr_2mib = max((((2 * 1024 * 1024) // in_row) // gran) * gran, gran)
    tr = min(tr, max(tr_8blocks, tr_2mib))
    tr_2blocks = _round_up(_cdiv(rows, 2), gran)
    tr = min(tr, max(tr_2blocks, gran))

    tr = min((tr // gran) * gran, (rows // gran) * gran)
    return max(tr, gran)


def _gem_kernel(x_ref, seg_ref, o_ref, *, p: float, eps: float, inv_hw: float):
    # x_ref   : (TR, L) input tile   (L = g*HW: g channel maps per row)
    # seg_ref : (L, G)  0/1 segment matrix (column j sums channel j's HW slice)
    # o_ref   : (TR, G) pooled outputs
    x = x_ref[...].astype(jnp.float32)
    x = jnp.maximum(x, eps)                       # clamp(min=eps)

    # x ** p: integer-exponent fast path keeps work on the 4 VALU slots instead
    # of exp(p*log(x)) on the single EUP port.
    if float(p).is_integer() and 1 <= int(p) <= 8:
        xp = x
        for _ in range(int(p) - 1):
            xp = xp * x
    else:
        xp = jnp.power(x, p)

    # Segmented row-sum on the MXU: one vmatmul push per LHS vreg, absorbs the
    # L -> 128k lane padding, keeps VPU/XLU free.
    s = jnp.dot(xp, seg_ref[...], preferred_element_type=jnp.float32)  # (TR, G)

    y = jnp.power(s * inv_hw, 1.0 / p)            # mean ** (1/p); s >= eps**p > 0
    o_ref[...] = y.astype(o_ref.dtype)


def generalized_mean_pooling(x: jax.Array, *, p: float = 3.0, eps: float = 1e-6) -> jax.Array:
    """GeM pooling with output_size=1. x is NCHW, returns (B, C, 1, 1)."""
    # TODO(synk): only global pooling (output_size=1) is implemented; general
    #             adaptive_avg_pool2d output sizes would need different tiling.
    B, C, H, W = x.shape
    BC, HW = B * C, H * W

    g = _choose_group(BC)
    rows, l = BC // g, g * HW
    x2d = x.reshape(rows, l)  # free view of the contiguous NCHW buffer

    cap = _vmem_capacity_bytes()
    vmem_limit = min((cap * 3) // 4, 96 * 1024 * 1024)
    tr = _choose_tile_rows(rows, l, x.dtype.itemsize, vmem_limit)
    num_blocks = _cdiv(rows, tr)

    # 0/1 segment matrix: column j selects channel j's HW slice of a grouped row.
    seg = (jnp.arange(l, dtype=jnp.int32)[:, None] // HW
           == jnp.arange(g, dtype=jnp.int32)[None, :]).astype(jnp.float32)

    kernel = functools.partial(
        _gem_kernel, p=float(p), eps=float(eps), inv_hw=1.0 / float(HW)
    )

    out = pl.pallas_call(
        kernel,
        out_shape=jax.ShapeDtypeStruct((num_blocks * tr, g), x.dtype),
        grid=(num_blocks,),
        in_specs=[
            pl.BlockSpec((tr, l), lambda i: (i, 0)),   # streamed input rows
            pl.BlockSpec((l, g), lambda i: (0, 0)),    # segment matrix (resident)
        ],
        out_specs=pl.BlockSpec((tr, g), lambda i: (i, 0)),
        compiler_params=pltpu.CompilerParams(
            dimension_semantics=("parallel",),
            vmem_limit_bytes=int(vmem_limit),
        ),
    )(x2d, seg)

    # Valid results are the first BC entries of the row-major flattening; rows
    # coming from the partial last input block land past BC and are dropped.
    return out.reshape(-1)[:BC].reshape(B, C, 1, 1)


def _reference(x, p=3.0, eps=1e-6):
    xc = jnp.maximum(x, eps) ** p
    return jnp.mean(xc, axis=(2, 3), keepdims=True) ** (1.0 / p)


if __name__ == "__main__":
    key = jax.random.PRNGKey(0)
    k1, k2, k3, k4 = jax.random.split(key, 4)

    def check(x, p=3.0, eps=1e-6, atol=1e-5, rtol=1e-5):
        y = jax.block_until_ready(generalized_mean_pooling(x, p=p, eps=eps))
        y_ref = _reference(x.astype(jnp.float32), p=p, eps=eps)
        assert y.shape == (x.shape[0], x.shape[1], 1, 1), y.shape
        yf = y.astype(jnp.float32)
        rf = y_ref.astype(jnp.float32)
        assert jnp.allclose(yf, rf, atol=atol, rtol=rtol), (
            f"max abs err = {jnp.max(jnp.abs(yf - rf))}"
        )

    # Module params: norm (p) = 3.0, output_size = 1, eps = 1e-6
    # 1) lane-aligned spatial map (HW=256), grouped rows (g=8)
    check(jax.random.normal(k1, (2, 4, 16, 16), dtype=jnp.float32))
    # 2) 7x7 map (HW=49, not a multiple of 128), grouped rows (g=6)
    check(jax.random.normal(k2, (2, 3, 7, 7), dtype=jnp.float32))
    # 3) prime channel count -> g=1, multi-step grid with a partial last block
    check(jax.random.normal(k3, (1, 37, 5, 5), dtype=jnp.float32))
    # 4) bf16 input, 14x14 map (packed-dtype sublane granularity, g=2, 2 steps)
    check(jax.random.normal(k4, (2, 64, 14, 14), dtype=jnp.bfloat16),
          atol=2e-2, rtol=2e-2)

    print("KERNEL_OK")
</pallas_src>

<mosaic_0001>
module attributes {stable_mosaic.version = 11 : i64} {
  func.func @_gem_kernel(%arg0: i32, %arg1: memref<1x2048xf32, #tpu.memory_space<vmem>>, %arg2: memref<2048x8xf32, #tpu.memory_space<vmem>>, %arg3: memref<1x8xf32, #tpu.memory_space<vmem>>) attributes {dimension_semantics = [#tpu.dimension_semantics<parallel>], iteration_bounds = array<i64: 1>, scalar_prefetch = 0 : i64, scratch_operands = 0 : i64, tpu.core_type = #tpu.core_type<tc>, window_params = [{transform_indices = @transform_0, window_bounds = array<i64: 1, 2048>}, {pipeline_mode = #tpu.pipeline_mode<synchronous>, transform_indices = @transform_1, window_bounds = array<i64: 2048, 8>}, {transform_indices = @transform_2, window_bounds = array<i64: 1, 8>}]} {
    %c0 = arith.constant 0 : index
    %c0_0 = arith.constant 0 : index
    %0 = vector.load %arg1[%c0, %c0_0] : memref<1x2048xf32, #tpu.memory_space<vmem>>, vector<1x2048xf32>
    %cst = arith.constant 9.99999997E-7 : f32
    %1 = vector.broadcast %cst : f32 to vector<1x2048xf32>
    %2 = arith.maximumf %0, %1 : vector<1x2048xf32>
    %3 = arith.mulf %2, %2 : vector<1x2048xf32>
    %4 = arith.mulf %3, %2 : vector<1x2048xf32>
    %c0_1 = arith.constant 0 : index
    %c0_2 = arith.constant 0 : index
    %5 = vector.load %arg2[%c0_1, %c0_2] : memref<2048x8xf32, #tpu.memory_space<vmem>>, vector<2048x8xf32>
    %cst_3 = arith.constant dense<0.000000e+00> : vector<1x8xf32>
    %6 = tpu.matmul %4, %5, %cst_3 {dimension_numbers = #tpu.dot_dimension_numbers<[1], [0], [0], [1], [0, 0, 1, 1], [], []>} : vector<1x2048xf32>, vector<2048x8xf32>, vector<1x8xf32> -> vector<1x8xf32>
    %cst_4 = arith.constant 3.906250e-03 : f32
    %7 = vector.broadcast %cst_4 : f32 to vector<1x8xf32>
    %8 = arith.mulf %6, %7 : vector<1x8xf32>
    %cst_5 = arith.constant 0.333333343 : f32
    %9 = vector.broadcast %cst_5 : f32 to vector<1x8xf32>
    %10 = math.powf %8, %9 : vector<1x8xf32>
    %c0_6 = arith.constant 0 : index
    %c0_7 = arith.constant 0 : index
    %11 = vector.load %arg3[%c0_6, %c0_7] : memref<1x8xf32, #tpu.memory_space<vmem>>, vector<1x8xf32>
    tpu.vector_store %arg3[%c0_6, %c0_7], %10 {strides = array<i32>} : memref<1x8xf32, #tpu.memory_space<vmem>>, vector<1x8xf32>,
    return
  }
  func.func @transform_0(%arg0: i32) -> (i32, i32) {
    %c0_i32 = arith.constant 0 : i32
    %c0_i32_0 = arith.constant 0 : i32
    return %arg0, %c0_i32 : i32, i32
  }
  func.func @transform_1(%arg0: i32) -> (i32, i32) {
    %c0_i32 = arith.constant 0 : i32
    %c0_i32_0 = arith.constant 0 : i32
    %c0_i32_1 = arith.constant 0 : i32
    return %c0_i32, %c0_i32_0 : i32, i32
  }
  func.func @transform_2(%arg0: i32) -> (i32, i32) {
    %c0_i32 = arith.constant 0 : i32
    %c0_i32_0 = arith.constant 0 : i32
    return %arg0, %c0_i32 : i32, i32
  }
}

</mosaic_0001>

<bundles_post_ra>
// kernel: tpu_custom_call.1
= control target key start
LH: loop header
LB: loop body
LE: loop exit
PB: predicated region body
PF: predicated region fallthrough
CT: control target
= control target key end

     0   :  { %v278_v63 = vlaneseq  ;;  %s2383_s0 = inlined_call_operand.vmem [shape: f32[1,2048], index: 0, kind: input, shape index: {}]   ;;  %s2384_s1 = inlined_call_operand.vmem [shape: f32[2048,8], index: 1, kind: input, shape index: {}]   ;;  %s2385_s2 = inlined_call_operand.hbm [shape: f32[1,8], index: 2, kind: output, shape index: {}]  }
   0x1   :  { %v36_v0 = vld [vmem:[%s2384_s1 + $0x80] sm:$0xff]  ;;  %v37_v1 = vld [vmem:[%s2384_s1 + $0x88] sm:$0xff]  ;;  %v38_v11 = vld [vmem:[%s2384_s1 + $0x90] sm:$0xff] }
   0x2   :  { %v68_v2 = vld [vmem:[%s2384_s1 + $0x180] sm:$0xff]  ;;  %v1216_v3 = vpack.c.bf16 %v37_v1, %v36_v0  ;;  %v69_v4 = vld [vmem:[%s2384_s1 + $0x188] sm:$0xff]  ;;  %v39_v13 = vld [vmem:[%s2384_s1 + $0x98] sm:$0xff] }
   0x3   :  { %v20_v5 = vld [vmem:[%s2384_s1] sm:$0xff]  ;;  %v21_v6 = vld [vmem:[%s2384_s1 + $0x8] sm:$0xff]  ;;  %v1248_v7 = vpack.c.bf16 %v69_v4, %v68_v2  ;;  %v70_v14 = vld [vmem:[%s2384_s1 + $0x190] sm:$0xff]  ;;  %v1220_v16 = vpack.c.bf16 %v39_v13, %v38_v11  ;;  %v1694_v13 = vshrl.u32 %v278_v63, 7 }
   0x4   :  { %v1218_v8 = vpack.c.bf16 %v21_v6, %v20_v5  ;;  %v52_v9 = vld [vmem:[%s2384_s1 + $0x100] sm:$0xff]  ;;  %v53_v10 = vld [vmem:[%s2384_s1 + $0x108] sm:$0xff]  ;;  %1217 = vmatprep.subr.bf16.mxu0 %v1216_v3  ;;  %v71_v15 = vld [vmem:[%s2384_s1 + $0x198] sm:$0xff] }
   0x5   :  { %v1250_v12 = vpack.c.bf16 %v53_v10, %v52_v9  ;;  %1249 = vmatprep.subr.bf16.mxu1 %v1248_v7  ;;  %v1252_v17 = vpack.c.bf16 %v71_v15, %v70_v14  ;;  %v22_v18 = vld [vmem:[%s2384_s1 + $0x10] sm:$0xff]  ;;  %v23_v19 = vld [vmem:[%s2384_s1 + $0x18] sm:$0xff]  ;;  %v40_v23 = vld [vmem:[%s2384_s1 + $0xa0] sm:$0xff] }
   0x6   :  { %1219 = vmatpush3.bf16.msra.mxu0 %v1218_v8  ;;  %v54_v20 = vld [vmem:[%s2384_s1 + $0x110] sm:$0xff]  ;;  %v1222_v21 = vpack.c.bf16 %v23_v19, %v22_v18  ;;  %v55_v22 = vld [vmem:[%s2384_s1 + $0x118] sm:$0xff]  ;;  %v41_v24 = vld [vmem:[%s2384_s1 + $0xa8] sm:$0xff] }
   0x7   :  { %1251 = vmatpush3.bf16.msra.mxu1 %v1250_v12  ;;  %1221 = vmatprep.subr.bf16.mxu0 %v1220_v16  ;;  %v1254_v25 = vpack.c.bf16 %v55_v22, %v54_v20  ;;  %v1224_v26 = vpack.c.bf16 %v41_v24, %v40_v23  ;;  %v72_v27 = vld [vmem:[%s2384_s1 + $0x1a0] sm:$0xff]  ;;  %v73_v28 = vld [vmem:[%s2384_s1 + $0x1a8] sm:$0xff]  ;;  %v42_v35 = vld [vmem:[%s2384_s1 + $0xb0] sm:$0xff] }
   0x8   :  { %1253 = vmatprep.subr.bf16.mxu1 %v1252_v17  ;;  %v24_v29 = vld [vmem:[%s2384_s1 + $0x20] sm:$0xff]  ;;  %v1256_v30 = vpack.c.bf16 %v73_v28, %v72_v27  ;;  %v25_v31 = vld [vmem:[%s2384_s1 + $0x28] sm:$0xff]  ;;  %v43_v36 = vld [vmem:[%s2384_s1 + $0xb8] sm:$0xff]  ;;  %v284_v28 = vsub.s32 1, %v1694_v13 }
   0x9   :  { %v56_v32 = vld [vmem:[%s2384_s1 + $0x120] sm:$0xff]  ;;  %v57_v33 = vld [vmem:[%s2384_s1 + $0x128] sm:$0xff]  ;;  %v1226_v34 = vpack.c.bf16 %v25_v31, %v24_v29  ;;  %v74_v37 = vld [vmem:[%s2384_s1 + $0x1b0] sm:$0xff]  ;;  %v1228_v39 = vpack.c.bf16 %v43_v36, %v42_v35  ;;  %v292_v29 = vsub.s32 3, %v1694_v13 }
   0xa   :  { %1223 = vmatpush3.bf16.msra.mxu0 %v1222_v21  ;;  %v1258_v38 = vpack.c.bf16 %v57_v33, %v56_v32  ;;  %v75_v40 = vld [vmem:[%s2384_s1 + $0x1b8] sm:$0xff]  ;;  %v26_v41 = vld [vmem:[%s2384_s1 + $0x30] sm:$0xff]  ;;  %v44_v46 = vld [vmem:[%s2384_s1 + $0xc0] sm:$0xff] }
   0xb   :  { %1255 = vmatpush3.bf16.msra.mxu1 %v1254_v25  ;;  %1225 = vmatprep.subr.bf16.mxu0 %v1224_v26  ;;  %v27_v42 = vld [vmem:[%s2384_s1 + $0x38] sm:$0xff]  ;;  %v1260_v43 = vpack.c.bf16 %v75_v40, %v74_v37  ;;  %v58_v44 = vld [vmem:[%s2384_s1 + $0x130] sm:$0xff]  ;;  %v45_v47 = vld [vmem:[%s2384_s1 + $0xc8] sm:$0xff]  ;;  %v280_v40 = vsub.s32 0, %v1694_v13 }
   0xc   :  { %1257 = vmatprep.subr.bf16.mxu1 %v1256_v30  ;;  %v59_v45 = vld [vmem:[%s2384_s1 + $0x138] sm:$0xff]  ;;  %v76_v48 = vld [vmem:[%s2384_s1 + $0x1c0] sm:$0xff]  ;;  %v77_v49 = vld [vmem:[%s2384_s1 + $0x1c8] sm:$0xff]  ;;  %v1230_v50 = vpack.c.bf16 %v27_v42, %v26_v41  ;;  %v1232_v52 = vpack.c.bf16 %v45_v47, %v44_v46  ;;  %v288_v46 = vsub.s32 2, %v1694_v13 }
   0xd   :  { %v1262_v51 = vpack.c.bf16 %v59_v45, %v58_v44  ;;  %v28_v53 = vld [vmem:[%s2384_s1 + $0x40] sm:$0xff]  ;;  %v29_v54 = vld [vmem:[%s2384_s1 + $0x48] sm:$0xff]  ;;  %v1264_v56 = vpack.c.bf16 %v77_v49, %v76_v48  ;;  %v46_v58 = vld [vmem:[%s2384_s1 + $0xd0] sm:$0xff] }
   0xe   :  { %1227 = vmatpush3.bf16.msra.mxu0 %v1226_v34  ;;  %v60_v55 = vld [vmem:[%s2384_s1 + $0x140] sm:$0xff]  ;;  %v61_v57 = vld [vmem:[%s2384_s1 + $0x148] sm:$0xff]  ;;  %v47_v59 = vld [vmem:[%s2384_s1 + $0xd8] sm:$0xff]  ;;  %v1234_v62 = vpack.c.bf16 %v29_v54, %v28_v53 }
   0xf   :  { %1259 = vmatpush3.bf16.msra.mxu1 %v1258_v38  ;;  %1229 = vmatprep.subr.bf16.mxu0 %v1228_v39  ;;  %v78_v60 = vld [vmem:[%s2384_s1 + $0x1d0] sm:$0xff]  ;;  %v79_v61 = vld [vmem:[%s2384_s1 + $0x1d8] sm:$0xff]  ;;  %v1266_v0 = vpack.c.bf16 %v61_v57, %v60_v55  ;;  %v1236_v1 = vpack.c.bf16 %v47_v59, %v46_v58  ;;  %v48_v7 = vld [vmem:[%s2384_s1 + $0xe0] sm:$0xff] }
  0x10   :  { %1261 = vmatprep.subr.bf16.mxu1 %v1260_v43  ;;  %v30_v2 = vld [vmem:[%s2384_s1 + $0x50] sm:$0xff]  ;;  %v31_v3 = vld [vmem:[%s2384_s1 + $0x58] sm:$0xff]  ;;  %v1268_v5 = vpack.c.bf16 %v79_v61, %v78_v60  ;;  %v49_v8 = vld [vmem:[%s2384_s1 + $0xe8] sm:$0xff]  ;;  %v308_v60 = vsub.s32 7, %v1694_v13 }
  0x11   :  { %v62_v4 = vld [vmem:[%s2384_s1 + $0x150] sm:$0xff]  ;;  %v63_v6 = vld [vmem:[%s2384_s1 + $0x158] sm:$0xff]  ;;  %v80_v9 = vld [vmem:[%s2384_s1 + $0x1e0] sm:$0xff]  ;;  %v1238_v11 = vpack.c.bf16 %v31_v3, %v30_v2  ;;  %v1240_v15 = vpack.c.bf16 %v49_v8, %v48_v7 }
  0x12   :  { %1231 = vmatpush3.bf16.msra.mxu0 %v1230_v50  ;;  %v81_v10 = vld [vmem:[%s2384_s1 + $0x1e8] sm:$0xff]  ;;  %v32_v12 = vld [vmem:[%s2384_s1 + $0x60] sm:$0xff]  ;;  %v1270_v14 = vpack.c.bf16 %v63_v6, %v62_v4  ;;  %v50_v21 = vld [vmem:[%s2384_s1 + $0xf0] sm:$0xff] }
  0x13   :  { %1263 = vmatpush3.bf16.msra.mxu1 %v1262_v51  ;;  %1233 = vmatprep.subr.bf16.mxu0 %v1232_v52  ;;  %v33_v16 = vld [vmem:[%s2384_s1 + $0x68] sm:$0xff]  ;;  %v64_v17 = vld [vmem:[%s2384_s1 + $0x160] sm:$0xff]  ;;  %v1272_v19 = vpack.c.bf16 %v81_v10, %v80_v9  ;;  %v51_v22 = vld [vmem:[%s2384_s1 + $0xf8] sm:$0xff] }
  0x14   :  { %1265 = vmatprep.subr.bf16.mxu1 %v1264_v56  ;;  %v12_v18 = vld [vmem:[%s2383_s0] sm:$0xff]  ;;  %v65_v20 = vld [vmem:[%s2384_s1 + $0x168] sm:$0xff]  ;;  %v82_v24 = vld [vmem:[%s2384_s1 + $0x1f0] sm:$0xff]  ;;  %v1242_v26 = vpack.c.bf16 %v33_v16, %v32_v12  ;;  %v1244_v31 = vpack.c.bf16 %v51_v22, %v50_v21  ;;  %v300_v56 = vsub.s32 5, %v1694_v13 }
  0x15   :  { %v14_v23 = vmax.f32 %v12_v18, 1e-06  ;;  %v83_v25 = vld [vmem:[%s2384_s1 + $0x1f8] sm:$0xff]  ;;  %v1274_v30 = vpack.c.bf16 %v65_v20, %v64_v17  ;;  %v34_v32 = vld [vmem:[%s2384_s1 + $0x70] sm:$0xff]  ;;  %v100_v38 = vld [vmem:[%s2384_s1 + $0x280] sm:$0xff] }
  0x16   :  { %1235 = vmatpush3.bf16.msra.mxu0 %v1234_v62  ;;  %v35_v33 = vld [vmem:[%s2384_s1 + $0x78] sm:$0xff]  ;;  %v66_v34 = vld [vmem:[%s2384_s1 + $0x170] sm:$0xff]  ;;  %v1276_v35 = vpack.c.bf16 %v83_v25, %v82_v24  ;;  %v101_v39 = vld [vmem:[%s2384_s1 + $0x288] sm:$0xff] }
  0x17   :  { %1267 = vmatpush3.bf16.msra.mxu1 %v1266_v0  ;;  %1237 = vmatprep.subr.bf16.mxu0 %v1236_v1  ;;  %v16_v27 = vmul.f32 %v14_v23, %v14_v23  ;;  %v67_v36 = vld [vmem:[%s2384_s1 + $0x178] sm:$0xff]  ;;  %v132_v41 = vld [vmem:[%s2384_s1 + $0x380] sm:$0xff]  ;;  %v133_v42 = vld [vmem:[%s2384_s1 + $0x388] sm:$0xff]  ;;  %v1246_v43 = vpack.c.bf16 %v35_v33, %v34_v32  ;;  %v1280_v48 = vpack.c.bf16 %v101_v39, %v100_v38 }
  0x18   :  { %1269 = vmatprep.subr.bf16.mxu1 %v1268_v5  ;;  %v1278_v47 = vpack.c.bf16 %v67_v36, %v66_v34  ;;  %v84_v49 = vld [vmem:[%s2384_s1 + $0x200] sm:$0xff]  ;;  %v85_v50 = vld [vmem:[%s2384_s1 + $0x208] sm:$0xff]  ;;  %v1312_v52 = vpack.c.bf16 %v133_v42, %v132_v41  ;;  %v102_v54 = vld [vmem:[%s2384_s1 + $0x290] sm:$0xff] }
  0x19   :  { %v1734_v37 = vmul.f32 %v16_v27, %v14_v23  ;;  %v116_v51 = vld [vmem:[%s2384_s1 + $0x300] sm:$0xff]  ;;  %v117_v53 = vld [vmem:[%s2384_s1 + $0x308] sm:$0xff]  ;;  %v103_v55 = vld [vmem:[%s2384_s1 + $0x298] sm:$0xff]  ;;  %v1282_v62 = vpack.c.bf16 %v85_v50, %v84_v49 }
  0x1a   :  { %1239 = vmatpush3.bf16.msra.mxu0 %v1238_v11  ;;  %v134_v58 = vld [vmem:[%s2384_s1 + $0x390] sm:$0xff]  ;;  %v135_v59 = vld [vmem:[%s2384_s1 + $0x398] sm:$0xff]  ;;  %v1314_v63 = vpack.c.bf16 %v117_v53, %v116_v51  ;;  %v1284_v0 = vpack.c.bf16 %v103_v55, %v102_v54  ;;  %v104_v6 = vld [vmem:[%s2384_s1 + $0x2a0] sm:$0xff] }
  0x1b   :  { %1271 = vmatpush3.bf16.msra.mxu1 %v1270_v14  ;;  %1241 = vmatprep.subr.bf16.mxu0 %v1240_v15  ;;  %v285_v44 = vrot.slane %v1734_v37, %v284_v28  ;;  %v293_v45 = vrot.slane %v1734_v37, %v292_v29  ;;  %v281_v57 = vrot.slane %v1734_v37, %v280_v40  ;;  %v86_v1 = vld [vmem:[%s2384_s1 + $0x210] sm:$0xff]  ;;  %v87_v2 = vld [vmem:[%s2384_s1 + $0x218] sm:$0xff]  ;;  %v105_v7 = vld [vmem:[%s2384_s1 + $0x2a8] sm:$0xff] }
  0x1c   :  { %1273 = vmatprep.subr.bf16.mxu1 %v1272_v19  ;;  %v289_v61 = vrot.slane %v1734_v37, %v288_v46  ;;  %v118_v3 = vld [vmem:[%s2384_s1 + $0x310] sm:$0xff]  ;;  %v1316_v4 = vpack.c.bf16 %v135_v59, %v134_v58  ;;  %v119_v5 = vld [vmem:[%s2384_s1 + $0x318] sm:$0xff]  ;;  %v301_v8 = vrot.slane %v1734_v37, %v300_v56  ;;  %v136_v9 = vld [vmem:[%s2384_s1 + $0x3a0] sm:$0xff]  ;;  %v309_v11 = vrot.slane %v1734_v37, %v308_v60 }
  0x1d   :  { %422 = vmatprep.mubr.f32.mxu0 %v285_v44  ;;  %492 = vmatprep.mubr.f32.mxu1 %v293_v45  ;;  %v137_v10 = vld [vmem:[%s2384_s1 + $0x3a8] sm:$0xff]  ;;  %v1286_v12 = vpack.c.bf16 %v87_v2, %v86_v1  ;;  %v1318_v14 = vpack.c.bf16 %v119_v5, %v118_v3  ;;  %v1288_v15 = vpack.c.bf16 %v105_v7, %v104_v6  ;;  %v88_v16 = vld [vmem:[%s2384_s1 + $0x220] sm:$0xff]  ;;  %v106_v21 = vld [vmem:[%s2384_s1 + $0x2b0] sm:$0xff] }
  0x1e   :  { %1243 = vmatpush3.bf16.msra.mxu0 %v1242_v26  ;;  %v89_v17 = vld [vmem:[%s2384_s1 + $0x228] sm:$0xff]  ;;  %v120_v18 = vld [vmem:[%s2384_s1 + $0x320] sm:$0xff]  ;;  %v1320_v19 = vpack.c.bf16 %v137_v10, %v136_v9  ;;  %v107_v22 = vld [vmem:[%s2384_s1 + $0x2b8] sm:$0xff] }
  0x1f   :  { %1275 = vmatpush3.bf16.msra.mxu1 %v1274_v30  ;;  %1245 = vmatprep.subr.bf16.mxu0 %v1244_v31  ;;  %v121_v20 = vld [vmem:[%s2384_s1 + $0x328] sm:$0xff]  ;;  %v138_v23 = vld [vmem:[%s2384_s1 + $0x3b0] sm:$0xff]  ;;  %v139_v24 = vld [vmem:[%s2384_s1 + $0x3b8] sm:$0xff]  ;;  %v1290_v25 = vpack.c.bf16 %v89_v17, %v88_v16  ;;  %v1292_v27 = vpack.c.bf16 %v107_v22, %v106_v21 }
  0x20   :  { %1277 = vmatprep.subr.bf16.mxu1 %v1276_v35  ;;  %v1322_v26 = vpack.c.bf16 %v121_v20, %v120_v18  ;;  %v90_v30 = vld [vmem:[%s2384_s1 + $0x230] sm:$0xff]  ;;  %v91_v31 = vld [vmem:[%s2384_s1 + $0x238] sm:$0xff]  ;;  %v1324_v33 = vpack.c.bf16 %v139_v24, %v138_v23  ;;  %v108_v35 = vld [vmem:[%s2384_s1 + $0x2c0] sm:$0xff] }
  0x21   :  { %v122_v32 = vld [vmem:[%s2384_s1 + $0x330] sm:$0xff]  ;;  %v123_v34 = vld [vmem:[%s2384_s1 + $0x338] sm:$0xff]  ;;  %v109_v36 = vld [vmem:[%s2384_s1 + $0x2c8] sm:$0xff]  ;;  %v1294_v41 = vpack.c.bf16 %v91_v31, %v90_v30 }
  0x22   :  { %1247 = vmatpush3.bf16.msra.mxu0 %v1246_v43  ;;  %v140_v38 = vld [vmem:[%s2384_s1 + $0x3c0] sm:$0xff]  ;;  %v141_v39 = vld [vmem:[%s2384_s1 + $0x3c8] sm:$0xff]  ;;  %v1326_v42 = vpack.c.bf16 %v123_v34, %v122_v32  ;;  %v1296_v43 = vpack.c.bf16 %v109_v36, %v108_v35  ;;  %v110_v50 = vld [vmem:[%s2384_s1 + $0x2d0] sm:$0xff] }
  0x23   :  { %1279 = vmatpush3.bf16.msra.mxu1 %v1278_v47  ;;  %1281 = vmatprep.subr.bf16.mxu0 %v1280_v48  ;;  %v92_v44 = vld [vmem:[%s2384_s1 + $0x240] sm:$0xff]  ;;  %v93_v45 = vld [vmem:[%s2384_s1 + $0x248] sm:$0xff]  ;;  %v1328_v48 = vpack.c.bf16 %v141_v39, %v140_v38  ;;  %v111_v51 = vld [vmem:[%s2384_s1 + $0x2d8] sm:$0xff] }
  0x24   :  { %1313 = vmatprep.subr.bf16.mxu1 %v1312_v52  ;;  %v124_v47 = vld [vmem:[%s2384_s1 + $0x340] sm:$0xff]  ;;  %v125_v49 = vld [vmem:[%s2384_s1 + $0x348] sm:$0xff]  ;;  %v142_v52 = vld [vmem:[%s2384_s1 + $0x3d0] sm:$0xff]  ;;  %v1298_v54 = vpack.c.bf16 %v93_v45, %v92_v44 }
  0x25   :  { %423 = vmatmul.mubr.f32.vlgmr.msra.gmra.mrb[0].mxu0 %v281_v57  ;;  %v143_v53 = vld [vmem:[%s2384_s1 + $0x3d8] sm:$0xff]  ;;  %v1330_v55 = vpack.c.bf16 %v125_v49, %v124_v47  ;;  %v1300_v57 = vpack.c.bf16 %v111_v51, %v110_v50  ;;  %v94_v58 = vld [vmem:[%s2384_s1 + $0x250] sm:$0xff]  ;;  %v113_v1 = vld [vmem:[%s2384_s1 + $0x2e8] sm:$0xff] }
  0x26   :  { %493 = vmatmul.mubr.f32.vlgmr.msra.gmra.mrb[0].mxu1 %v289_v61  ;;  %1283 = vmatpush3.bf16.msra.mxu0 %v1282_v62  ;;  %v95_v59 = vld [vmem:[%s2384_s1 + $0x258] sm:$0xff]  ;;  %v126_v61 = vld [vmem:[%s2384_s1 + $0x350] sm:$0xff]  ;;  %v1332_v62 = vpack.c.bf16 %v143_v53, %v142_v52  ;;  %v144_v2 = vld [vmem:[%s2384_s1 + $0x3e0] sm:$0xff] }
  0x27   :  { %1315 = vmatpush3.bf16.msra.mxu1 %v1314_v63  ;;  %1285 = vmatprep.subr.bf16.mxu0 %v1284_v0  ;;  %v127_v63 = vld [vmem:[%s2384_s1 + $0x358] sm:$0xff]  ;;  %v112_v0 = vld [vmem:[%s2384_s1 + $0x2e0] sm:$0xff]  ;;  %v145_v3 = vld [vmem:[%s2384_s1 + $0x3e8] sm:$0xff] }
  0x28   :  { %1317 = vmatprep.subr.bf16.mxu1 %v1316_v4  ;;  %562 = vmatprep.mubr.f32.mxu0 %v301_v8  ;;  %v1302_v4 = vpack.c.bf16 %v95_v59, %v94_v58  ;;  %v1334_v5 = vpack.c.bf16 %v127_v63, %v126_v61  ;;  %v1304_v6 = vpack.c.bf16 %v113_v1, %v112_v0  ;;  %v96_v7 = vld [vmem:[%s2384_s1 + $0x260] sm:$0xff]  ;;  %v97_v8 = vld [vmem:[%s2384_s1 + $0x268] sm:$0xff]  ;;  %v147_v16 = vld [vmem:[%s2384_s1 + $0x3f8] sm:$0xff] }
  0x29   :  { %632 = vmatprep.mubr.f32.mxu1 %v309_v11  ;;  %v128_v9 = vld [vmem:[%s2384_s1 + $0x360] sm:$0xff]  ;;  %v1336_v10 = vpack.c.bf16 %v145_v3, %v144_v2  ;;  %v129_v11 = vld [vmem:[%s2384_s1 + $0x368] sm:$0xff]  ;;  %v1306_v17 = vpack.c.bf16 %v97_v8, %v96_v7  ;;  %v98_v20 = vld [vmem:[%s2384_s1 + $0x270] sm:$0xff] }
  0x2a   :  { %1287 = vmatpush3.bf16.msra.mxu0 %v1286_v12  ;;  %v114_v12 = vld [vmem:[%s2384_s1 + $0x2f0] sm:$0xff]  ;;  %v1338_v18 = vpack.c.bf16 %v129_v11, %v128_v9  ;;  %v99_v21 = vld [vmem:[%s2384_s1 + $0x278] sm:$0xff]  ;;  %v196_v30 = vld [vmem:[%s2384_s1 + $0x580] sm:$0xff] }
  0x2b   :  { %1319 = vmatpush3.bf16.msra.mxu1 %v1318_v14  ;;  %1289 = vmatprep.subr.bf16.mxu0 %v1288_v15  ;;  %v115_v14 = vld [vmem:[%s2384_s1 + $0x2f8] sm:$0xff]  ;;  %v146_v15 = vld [vmem:[%s2384_s1 + $0x3f0] sm:$0xff]  ;;  %v197_v31 = vld [vmem:[%s2384_s1 + $0x588] sm:$0xff]  ;;  %v1310_v32 = vpack.c.bf16 %v99_v21, %v98_v20 }
  0x2c   :  { %1321 = vmatprep.subr.bf16.mxu1 %v1320_v19  ;;  %v1308_v19 = vpack.c.bf16 %v115_v14, %v114_v12  ;;  %v130_v22 = vld [vmem:[%s2384_s1 + $0x370] sm:$0xff]  ;;  %v1340_v23 = vpack.c.bf16 %v147_v16, %v146_v15  ;;  %v131_v24 = vld [vmem:[%s2384_s1 + $0x378] sm:$0xff]  ;;  %v148_v36 = vld [vmem:[%s2384_s1 + $0x400] sm:$0xff] }
  0x2d   :  { %v1342_v34 = vpack.c.bf16 %v131_v24, %v130_v22  ;;  %v149_v38 = vld [vmem:[%s2384_s1 + $0x408] sm:$0xff]  ;;  %v180_v39 = vld [vmem:[%s2384_s1 + $0x500] sm:$0xff]  ;;  %v167_v44 = vld [vmem:[%s2384_s1 + $0x498] sm:$0xff] }
  0x2e   :  { %1291 = vmatpush3.bf16.msra.mxu0 %v1290_v25  ;;  %v164_v25 = vld [vmem:[%s2384_s1 + $0x480] sm:$0xff]  ;;  %v198_v47 = vld [vmem:[%s2384_s1 + $0x590] sm:$0xff]  ;;  %v1346_v49 = vpack.c.bf16 %v149_v38, %v148_v36  ;;  %v13_v51 = vld [vmem:[%s2383_s0 + $0x8] sm:$0xff] }
  0x2f   :  { %1323 = vmatpush3.bf16.msra.mxu1 %v1322_v26  ;;  %1293 = vmatprep.subr.bf16.mxu0 %v1292_v27  ;;  %v165_v26 = vld [vmem:[%s2384_s1 + $0x488] sm:$0xff]  ;;  %v296_v27 = vsub.s32 4, %v1694_v13  ;;  %v183_v59 = vld [vmem:[%s2384_s1 + $0x518] sm:$0xff]  ;;  %v168_v61 = vld [vmem:[%s2384_s1 + $0x4a0] sm:$0xff] }
  0x30   :  { %1325 = vmatprep.subr.bf16.mxu1 %v1324_v33  ;;  %v304_v33 = vsub.s32 6, %v1694_v13  ;;  %v1344_v35 = vpack.c.bf16 %v165_v26, %v164_v25  ;;  %v200_v63 = vld [vmem:[%s2384_s1 + $0x5a0] sm:$0xff]  ;;  %v201_v0 = vld [vmem:[%s2384_s1 + $0x5a8] sm:$0xff]  ;;  %v170_v11 = vld [vmem:[%s2384_s1 + $0x4b0] sm:$0xff] }
  0x31   :  { %v297_v45 = vrot.slane %v1734_v37, %v296_v27  ;;  %v184_v7 = vld [vmem:[%s2384_s1 + $0x520] sm:$0xff]  ;;  %v1384_v9 = vpack.c.bf16 %v201_v0, %v200_v63  ;;  %v171_v12 = vld [vmem:[%s2384_s1 + $0x4b8] sm:$0xff]  ;;  %v202_v14 = vld [vmem:[%s2384_s1 + $0x5b0] sm:$0xff] }
  0x32   :  { %1295 = vmatpush3.bf16.msra.mxu0 %v1294_v41  ;;  %v1376_v41 = vpack.c.bf16 %v197_v31, %v196_v30  ;;  %v305_v50 = vrot.slane %v1734_v37, %v304_v33  ;;  %v182_v37 = vld [vmem:[%s2384_s1 + $0x510] sm:$0xff]  ;;  %v203_v15 = vld [vmem:[%s2384_s1 + $0x5b8] sm:$0xff]  ;;  %v1356_v20 = vpack.c.bf16 %v171_v12, %v170_v11  ;;  %v172_v24 = vld [vmem:[%s2384_s1 + $0x4c0] sm:$0xff] }
  0x33   :  { %1327 = vmatpush3.bf16.msra.mxu1 %v1326_v42  ;;  %1297 = vmatprep.subr.bf16.mxu0 %v1296_v43  ;;  %v181_v42 = vld [vmem:[%s2384_s1 + $0x508] sm:$0xff]  ;;  %v166_v43 = vld [vmem:[%s2384_s1 + $0x490] sm:$0xff]  ;;  %v1382_v3 = vpack.c.bf16 %v183_v59, %v182_v37  ;;  %v155_v22 = vld [vmem:[%s2384_s1 + $0x438] sm:$0xff] }
  0x34   :  { %1329 = vmatprep.subr.bf16.mxu1 %v1328_v48  ;;  %v199_v48 = vld [vmem:[%s2384_s1 + $0x598] sm:$0xff]  ;;  %v1378_v52 = vpack.c.bf16 %v181_v42, %v180_v39  ;;  %v1348_v53 = vpack.c.bf16 %v167_v44, %v166_v43  ;;  %v154_v21 = vld [vmem:[%s2384_s1 + $0x430] sm:$0xff]  ;;  %v173_v25 = vld [vmem:[%s2384_s1 + $0x4c8] sm:$0xff] }
  0x35   :  { %v1380_v58 = vpack.c.bf16 %v199_v48, %v198_v47  ;;  %v204_v26 = vld [vmem:[%s2384_s1 + $0x5c0] sm:$0xff]  ;;  %v205_v30 = vld [vmem:[%s2384_s1 + $0x5c8] sm:$0xff]  ;;  %v1358_v31 = vpack.c.bf16 %v155_v22, %v154_v21  ;;  %v174_v42 = vld [vmem:[%s2384_s1 + $0x4d0] sm:$0xff] }
  0x36   :  { %1299 = vmatpush3.bf16.msra.mxu0 %v1298_v54  ;;  %v150_v54 = vld [vmem:[%s2384_s1 + $0x410] sm:$0xff]  ;;  %v157_v36 = vld [vmem:[%s2384_s1 + $0x448] sm:$0xff]  ;;  %v188_v38 = vld [vmem:[%s2384_s1 + $0x540] sm:$0xff]  ;;  %v1392_v39 = vpack.c.bf16 %v205_v30, %v204_v26 }
  0x37   :  { %1331 = vmatpush3.bf16.msra.mxu1 %v1330_v55  ;;  %1301 = vmatprep.subr.bf16.mxu0 %v1300_v57  ;;  %v151_v55 = vld [vmem:[%s2384_s1 + $0x418] sm:$0xff]  ;;  %v15_v57 = vmax.f32 %v13_v51, 1e-06  ;;  %v206_v44 = vld [vmem:[%s2384_s1 + $0x5d0] sm:$0xff]  ;;  %v177_v37 = vld [vmem:[%s2384_s1 + $0x4e8] sm:$0xff] }
  0x38   :  { %1333 = vmatprep.subr.bf16.mxu1 %v1332_v62  ;;  %v169_v62 = vld [vmem:[%s2384_s1 + $0x4a8] sm:$0xff]  ;;  %v1350_v2 = vpack.c.bf16 %v151_v55, %v150_v54  ;;  %v175_v43 = vld [vmem:[%s2384_s1 + $0x4d8] sm:$0xff]  ;;  %v176_v55 = vld [vmem:[%s2384_s1 + $0x4e0] sm:$0xff] }
  0x39   :  { %v17_v1 = vmul.f32 %v15_v57, %v15_v57  ;;  %v159_v51 = vld [vmem:[%s2384_s1 + $0x458] sm:$0xff]  ;;  %v1368_v63 = vpack.c.bf16 %v177_v37, %v176_v55  ;;  %v161_v0 = vld [vmem:[%s2384_s1 + $0x468] sm:$0xff] }
  0x3a   :  { %1303 = vmatpush3.bf16.msra.mxu0 %v1302_v4  ;;  %v1352_v4 = vpack.c.bf16 %v169_v62, %v168_v61  ;;  %v191_v54 = vld [vmem:[%s2384_s1 + $0x558] sm:$0xff]  ;;  %v160_v61 = vld [vmem:[%s2384_s1 + $0x460] sm:$0xff] }
  0x3b   :  { %1335 = vmatpush3.bf16.msra.mxu1 %v1334_v5  ;;  %1305 = vmatprep.subr.bf16.mxu0 %v1304_v6  ;;  %v152_v5 = vld [vmem:[%s2384_s1 + $0x420] sm:$0xff]  ;;  %v153_v6 = vld [vmem:[%s2384_s1 + $0x428] sm:$0xff]  ;;  %v2030_v8 = vmul.f32 %v17_v1, %v15_v57 }
  0x3c   :  { %1337 = vmatprep.subr.bf16.mxu1 %v1336_v10  ;;  %v185_v10 = vld [vmem:[%s2384_s1 + $0x528] sm:$0xff]  ;;  %v208_v57 = vld [vmem:[%s2384_s1 + $0x5e0] sm:$0xff] }
  0x3d   :  { %v317_v16 = vrot.slane %v2030_v8, %v284_v28  ;;  %v186_v28 = vld [vmem:[%s2384_s1 + $0x530] sm:$0xff]  ;;  %v192_v1 = vld [vmem:[%s2384_s1 + $0x560] sm:$0xff] }
  0x3e   :  { %1307 = vmatpush3.bf16.msra.mxu0 %v1306_v17  ;;  %v325_v17 = vrot.slane %v2030_v8, %v292_v29  ;;  %v1388_v29 = vpack.c.bf16 %v203_v15, %v202_v14 }
  0x3f   :  { %1339 = vmatpush3.bf16.msra.mxu1 %v1338_v18  ;;  %1309 = vmatprep.subr.bf16.mxu0 %v1308_v19  ;;  %v1354_v18 = vpack.c.bf16 %v153_v6, %v152_v5  ;;  %v1386_v19 = vpack.c.bf16 %v185_v10, %v184_v7  ;;  %v179_v5 = vld [vmem:[%s2384_s1 + $0x4f8] sm:$0xff] }
  0x40   :  { %1341 = vmatprep.subr.bf16.mxu1 %v1340_v23  ;;  %v187_v23 = vld [vmem:[%s2384_s1 + $0x538] sm:$0xff] }
  0x42   :  { %1311 = vmatpush3.bf16.msra.mxu0 %v1310_v32  ;;  %v1390_v32 = vpack.c.bf16 %v187_v23, %v186_v28 }
  0x43   :  { %1343 = vmatpush3.bf16.msra.mxu1 %v1342_v34  ;;  %1345 = vmatprep.subr.bf16.mxu0 %v1344_v35  ;;  %v1360_v34 = vpack.c.bf16 %v173_v25, %v172_v24  ;;  %v156_v35 = vld [vmem:[%s2384_s1 + $0x440] sm:$0xff] }
  0x44   :  { %1377 = vmatprep.subr.bf16.mxu1 %v1376_v41  ;;  %v189_v41 = vld [vmem:[%s2384_s1 + $0x548] sm:$0xff]  ;;  %v1362_v47 = vpack.c.bf16 %v157_v36, %v156_v35 }
  0x45   :  { %563 = vmatmul.mubr.f32.vlgmr.msra.gmra.mrb[2].mxu0 %v297_v45  ;;  %v207_v45 = vld [vmem:[%s2384_s1 + $0x5d8] sm:$0xff]  ;;  %v1394_v48 = vpack.c.bf16 %v189_v41, %v188_v38 }
  0x46   :  { %1347 = vmatpush3.bf16.msra.mxu0 %v1346_v49  ;;  %633 = vmatmul.mubr.f32.vlgmr.msra.gmra.mrb[2].mxu1 %v305_v50  ;;  %v1364_v49 = vpack.c.bf16 %v175_v43, %v174_v42  ;;  %v158_v50 = vld [vmem:[%s2384_s1 + $0x450] sm:$0xff] }
  0x47   :  { %1379 = vmatpush3.bf16.msra.mxu1 %v1378_v52  ;;  %1349 = vmatprep.subr.bf16.mxu0 %v1348_v53  ;;  %v190_v52 = vld [vmem:[%s2384_s1 + $0x550] sm:$0xff]  ;;  %v1396_v53 = vpack.c.bf16 %v207_v45, %v206_v44  ;;  %v1366_v59 = vpack.c.bf16 %v159_v51, %v158_v50 }
  0x48   :  { %1381 = vmatprep.subr.bf16.mxu1 %v1380_v58  ;;  %702 = vmatprep.mubr.f32.mxu0 %v317_v16  ;;  %v209_v58 = vld [vmem:[%s2384_s1 + $0x5e8] sm:$0xff]  ;;  %v1398_v62 = vpack.c.bf16 %v191_v54, %v190_v52 }
  0x49   :  { %772 = vmatprep.mubr.f32.mxu1 %v325_v17 }
  0x4a   :  { %1351 = vmatpush3.bf16.msra.mxu0 %v1350_v2  ;;  %v193_v2 = vld [vmem:[%s2384_s1 + $0x568] sm:$0xff] }
  0x4b   :  { %1383 = vmatpush3.bf16.msra.mxu1 %v1382_v3  ;;  %1353 = vmatprep.subr.bf16.mxu0 %v1352_v4  ;;  %v1400_v3 = vpack.c.bf16 %v209_v58, %v208_v57  ;;  %v178_v4 = vld [vmem:[%s2384_s1 + $0x4f0] sm:$0xff] }
  0x4c   :  { %1385 = vmatprep.subr.bf16.mxu1 %v1384_v9 }
  0x4e   :  { %1355 = vmatpush3.bf16.msra.mxu0 %v1354_v18 }
  0x4f   :  { %1387 = vmatpush3.bf16.msra.mxu1 %v1386_v19  ;;  %1357 = vmatprep.subr.bf16.mxu0 %v1356_v20 }
  0x50   :  { %1389 = vmatprep.subr.bf16.mxu1 %v1388_v29 }
  0x52   :  { %1359 = vmatpush3.bf16.msra.mxu0 %v1358_v31 }
  0x53   :  { %1391 = vmatpush3.bf16.msra.mxu1 %v1390_v32  ;;  %1361 = vmatprep.subr.bf16.mxu0 %v1360_v34 }
  0x54   :  { %1393 = vmatprep.subr.bf16.mxu1 %v1392_v39 }
  0x56   :  { %1363 = vmatpush3.bf16.msra.mxu0 %v1362_v47 }
  0x57   :  { %1395 = vmatpush3.bf16.msra.mxu1 %v1394_v48  ;;  %1365 = vmatprep.subr.bf16.mxu0 %v1364_v49 }
  0x58   :  { %1397 = vmatprep.subr.bf16.mxu1 %v1396_v53 }
  0x59   :  { %7 = vsyncpa [#allocation3], 0  ;;  %v210_v6 = vld [vmem:[%s2384_s1 + $0x5f0] sm:$0xff]  ;;  %v211_v7 = vld [vmem:[%s2384_s1 + $0x5f8] sm:$0xff]  ;;  %v1370_v9 = vpack.c.bf16 %v161_v0, %v160_v61  ;;  %v1402_v10 = vpack.c.bf16 %v193_v2, %v192_v1  ;;  %v1372_v11 = vpack.c.bf16 %v179_v5, %v178_v4  ;;  %v313_v34 = vrot.slane %v2030_v8, %v280_v40 }
  0x5a   :  { %1367 = vmatpush3.bf16.msra.mxu0 %v1366_v59  ;;  %v162_v12 = vld [vmem:[%s2384_s1 + $0x470] sm:$0xff]  ;;  %v163_v14 = vld [vmem:[%s2384_s1 + $0x478] sm:$0xff]  ;;  %v1404_v16 = vpack.c.bf16 %v211_v7, %v210_v6  ;;  %v228_v18 = vld [vmem:[%s2384_s1 + $0x680] sm:$0xff]  ;;  %v321_v39 = vrot.slane %v2030_v8, %v288_v46  ;;  %v333_v49 = vrot.slane %v2030_v8, %v300_v56  ;;  %v341_v52 = vrot.slane %v2030_v8, %v308_v60 }
  0x5b   :  { %1399 = vmatpush3.bf16.msra.mxu1 %v1398_v62  ;;  %1369 = vmatprep.subr.bf16.mxu0 %v1368_v63  ;;  %v194_v15 = vld [vmem:[%s2384_s1 + $0x570] sm:$0xff]  ;;  %v195_v17 = vld [vmem:[%s2384_s1 + $0x578] sm:$0xff]  ;;  %v229_v19 = vld [vmem:[%s2384_s1 + $0x688] sm:$0xff]  ;;  %v1374_v22 = vpack.c.bf16 %v163_v14, %v162_v12  ;;  %vm920_vm4 = vcmask 57344  }
  0x5c   :  { %1401 = vmatprep.subr.bf16.mxu1 %v1400_v3  ;;  %v260_v20 = vld [vmem:[%s2384_s1 + $0x780] sm:$0xff]  ;;  %v261_v21 = vld [vmem:[%s2384_s1 + $0x788] sm:$0xff]  ;;  %v1406_v28 = vpack.c.bf16 %v195_v17, %v194_v15  ;;  %v1408_v29 = vpack.c.bf16 %v229_v19, %v228_v18  ;;  %v230_v31 = vld [vmem:[%s2384_s1 + $0x690] sm:$0xff] }
  0x5d   :  { %v212_v23 = vld [vmem:[%s2384_s1 + $0x600] sm:$0xff]  ;;  %v213_v24 = vld [vmem:[%s2384_s1 + $0x608] sm:$0xff]  ;;  %v1440_v26 = vpack.c.bf16 %v261_v21, %v260_v20  ;;  %v231_v32 = vld [vmem:[%s2384_s1 + $0x698] sm:$0xff] }
  0x5e   :  { %1371 = vmatpush3.bf16.msra.mxu0 %v1370_v9  ;;  %v244_v25 = vld [vmem:[%s2384_s1 + $0x700] sm:$0xff]  ;;  %v245_v30 = vld [vmem:[%s2384_s1 + $0x708] sm:$0xff]  ;;  %v262_v35 = vld [vmem:[%s2384_s1 + $0x790] sm:$0xff]  ;;  %v1410_v38 = vpack.c.bf16 %v213_v24, %v212_v23  ;;  %v1412_v42 = vpack.c.bf16 %v231_v32, %v230_v31 }
  0x5f   :  { %1403 = vmatpush3.bf16.msra.mxu1 %v1402_v10  ;;  %1373 = vmatprep.subr.bf16.mxu0 %v1372_v11  ;;  %v263_v36 = vld [vmem:[%s2384_s1 + $0x798] sm:$0xff]  ;;  %v1442_v41 = vpack.c.bf16 %v245_v30, %v244_v25  ;;  %v214_v40 = vld [vmem:[%s2384_s1 + $0x610] sm:$0xff]  ;;  %v232_v47 = vld [vmem:[%s2384_s1 + $0x6a0] sm:$0xff] }
  0x60   :  { %1405 = vmatprep.subr.bf16.mxu1 %v1404_v16  ;;  %v215_v43 = vld [vmem:[%s2384_s1 + $0x618] sm:$0xff]  ;;  %v246_v44 = vld [vmem:[%s2384_s1 + $0x710] sm:$0xff]  ;;  %v1444_v45 = vpack.c.bf16 %v263_v36, %v262_v35  ;;  %v233_v48 = vld [vmem:[%s2384_s1 + $0x6a8] sm:$0xff] }
  0x61   :  { %v247_v46 = vld [vmem:[%s2384_s1 + $0x718] sm:$0xff]  ;;  %v264_v50 = vld [vmem:[%s2384_s1 + $0x7a0] sm:$0xff]  ;;  %v265_v51 = vld [vmem:[%s2384_s1 + $0x7a8] sm:$0xff]  ;;  %v1414_v53 = vpack.c.bf16 %v215_v43, %v214_v40  ;;  %v1416_v56 = vpack.c.bf16 %v233_v48, %v232_v47 }
  0x62   :  { %1375 = vmatpush3.bf16.msra.mxu0 %v1374_v22  ;;  %v1446_v54 = vpack.c.bf16 %v247_v46, %v246_v44  ;;  %v216_v55 = vld [vmem:[%s2384_s1 + $0x620] sm:$0xff]  ;;  %v217_v37 = vld [vmem:[%s2384_s1 + $0x628] sm:$0xff]  ;;  %v1448_v60 = vpack.c.bf16 %v265_v51, %v264_v50  ;;  %v234_v59 = vld [vmem:[%s2384_s1 + $0x6b0] sm:$0xff] }
  0x63   :  { %1407 = vmatpush3.bf16.msra.mxu1 %v1406_v28  ;;  %1409 = vmatprep.subr.bf16.mxu0 %v1408_v29  ;;  %v248_v57 = vld [vmem:[%s2384_s1 + $0x720] sm:$0xff]  ;;  %v249_v58 = vld [vmem:[%s2384_s1 + $0x728] sm:$0xff]  ;;  %v235_v61 = vld [vmem:[%s2384_s1 + $0x6b8] sm:$0xff]  ;;  %v1418_v0 = vpack.c.bf16 %v217_v37, %v216_v55 }
  0x64   :  { %1441 = vmatprep.subr.bf16.mxu1 %v1440_v26  ;;  %v266_v62 = vld [vmem:[%s2384_s1 + $0x7b0] sm:$0xff]  ;;  %v267_v63 = vld [vmem:[%s2384_s1 + $0x7b8] sm:$0xff]  ;;  %v1450_v1 = vpack.c.bf16 %v249_v58, %v248_v57  ;;  %v1420_v2 = vpack.c.bf16 %v235_v61, %v234_v59  ;;  %v236_v9 = vld [vmem:[%s2384_s1 + $0x6c0] sm:$0xff] }
  0x65   :  { %703 = vmatmul.mubr.f32.vlgmr.msra.gmra.mrb[4].mxu0 %v313_v34  ;;  %v218_v3 = vld [vmem:[%s2384_s1 + $0x630] sm:$0xff]  ;;  %v219_v4 = vld [vmem:[%s2384_s1 + $0x638] sm:$0xff]  ;;  %v1452_v6 = vpack.c.bf16 %v267_v63, %v266_v62  ;;  %v237_v10 = vld [vmem:[%s2384_s1 + $0x6c8] sm:$0xff]  ;;  %v329_v62 = vrot.slane %v2030_v8, %v296_v27  ;;  %v337_v63 = vrot.slane %v2030_v8, %v304_v33 }
  0x66   :  { %1411 = vmatpush3.bf16.msra.mxu0 %v1410_v38  ;;  %773 = vmatmul.mubr.f32.vlgmr.msra.gmra.mrb[4].mxu1 %v321_v39  ;;  %v250_v5 = vld [vmem:[%s2384_s1 + $0x730] sm:$0xff]  ;;  %v251_v7 = vld [vmem:[%s2384_s1 + $0x738] sm:$0xff]  ;;  %v268_v11 = vld [vmem:[%s2384_s1 + $0x7c0] sm:$0xff]  ;;  %v1422_v14 = vpack.c.bf16 %v219_v4, %v218_v3  ;;  %v1424_v16 = vpack.c.bf16 %v237_v10, %v236_v9 }
  0x67   :  { %1443 = vmatpush3.bf16.msra.mxu1 %v1442_v41  ;;  %1413 = vmatprep.subr.bf16.mxu0 %v1412_v42  ;;  %v269_v12 = vld [vmem:[%s2384_s1 + $0x7c8] sm:$0xff]  ;;  %v1454_v15 = vpack.c.bf16 %v251_v7, %v250_v5  ;;  %v220_v17 = vld [vmem:[%s2384_s1 + $0x640] sm:$0xff]  ;;  %v238_v22 = vld [vmem:[%s2384_s1 + $0x6d0] sm:$0xff] }
  0x68   :  { %1445 = vmatprep.subr.bf16.mxu1 %v1444_v45  ;;  %842 = vmatprep.mubr.f32.mxu0 %v333_v49  ;;  %v221_v18 = vld [vmem:[%s2384_s1 + $0x648] sm:$0xff]  ;;  %v252_v19 = vld [vmem:[%s2384_s1 + $0x740] sm:$0xff]  ;;  %v1456_v20 = vpack.c.bf16 %v269_v12, %v268_v11  ;;  %v239_v28 = vld [vmem:[%s2384_s1 + $0x6d8] sm:$0xff] }
  0x69   :  { %912 = vmatprep.mubr.f32.mxu1 %v341_v52  ;;  %v253_v21 = vld [vmem:[%s2384_s1 + $0x748] sm:$0xff]  ;;  %v270_v29 = vld [vmem:[%s2384_s1 + $0x7d0] sm:$0xff]  ;;  %v271_v23 = vld [vmem:[%s2384_s1 + $0x7d8] sm:$0xff]  ;;  %v1426_v24 = vpack.c.bf16 %v221_v18, %v220_v17  ;;  %v1428_v26 = vpack.c.bf16 %v239_v28, %v238_v22 }
  0x6a   :  { %1415 = vmatpush3.bf16.msra.mxu0 %v1414_v53  ;;  %v1458_v25 = vpack.c.bf16 %v253_v21, %v252_v19  ;;  %v222_v30 = vld [vmem:[%s2384_s1 + $0x650] sm:$0xff]  ;;  %v223_v31 = vld [vmem:[%s2384_s1 + $0x658] sm:$0xff]  ;;  %v1460_v34 = vpack.c.bf16 %v271_v23, %v270_v29  ;;  %v240_v36 = vld [vmem:[%s2384_s1 + $0x6e0] sm:$0xff] }
  0x6b   :  { %1447 = vmatpush3.bf16.msra.mxu1 %v1446_v54  ;;  %1417 = vmatprep.subr.bf16.mxu0 %v1416_v56  ;;  %v254_v32 = vld [vmem:[%s2384_s1 + $0x750] sm:$0xff]  ;;  %v255_v35 = vld [vmem:[%s2384_s1 + $0x758] sm:$0xff]  ;;  %v241_v38 = vld [vmem:[%s2384_s1 + $0x6e8] sm:$0xff]  ;;  %v1430_v42 = vpack.c.bf16 %v223_v31, %v222_v30 }
  0x6c   :  { %1449 = vmatprep.subr.bf16.mxu1 %v1448_v60  ;;  %v272_v39 = vld [vmem:[%s2384_s1 + $0x7e0] sm:$0xff]  ;;  %v273_v41 = vld [vmem:[%s2384_s1 + $0x7e8] sm:$0xff]  ;;  %v1462_v40 = vpack.c.bf16 %v255_v35, %v254_v32  ;;  %v1432_v43 = vpack.c.bf16 %v241_v38, %v240_v36  ;;  %v242_v49 = vld [vmem:[%s2384_s1 + $0x6f0] sm:$0xff] }
  0x6d   :  { %v224_v44 = vld [vmem:[%s2384_s1 + $0x660] sm:$0xff]  ;;  %v225_v45 = vld [vmem:[%s2384_s1 + $0x668] sm:$0xff]  ;;  %v1464_v47 = vpack.c.bf16 %v273_v41, %v272_v39  ;;  %v243_v50 = vld [vmem:[%s2384_s1 + $0x6f8] sm:$0xff] }
  0x6e   :  { %1419 = vmatpush3.bf16.msra.mxu0 %v1418_v0  ;;  %v256_v46 = vld [vmem:[%s2384_s1 + $0x760] sm:$0xff]  ;;  %v257_v48 = vld [vmem:[%s2384_s1 + $0x768] sm:$0xff]  ;;  %v274_v51 = vld [vmem:[%s2384_s1 + $0x7f0] sm:$0xff]  ;;  %v1434_v53 = vpack.c.bf16 %v225_v45, %v224_v44  ;;  %v1436_v56 = vpack.c.bf16 %v243_v50, %v242_v49 }
  0x6f   :  { %1451 = vmatpush3.bf16.msra.mxu1 %v1450_v1  ;;  %1421 = vmatprep.subr.bf16.mxu0 %v1420_v2  ;;  %v275_v52 = vld [vmem:[%s2384_s1 + $0x7f8] sm:$0xff]  ;;  %v1466_v54 = vpack.c.bf16 %v257_v48, %v256_v46  ;;  %v226_v55 = vld [vmem:[%s2384_s1 + $0x670] sm:$0xff] }
  0x70   :  { %1453 = vmatprep.subr.bf16.mxu1 %v1452_v6  ;;  %v227_v37 = vld [vmem:[%s2384_s1 + $0x678] sm:$0xff]  ;;  %v1468_v57 = vpack.c.bf16 %v275_v52, %v274_v51  ;;  %v258_v60 = vld [vmem:[%s2384_s1 + $0x770] sm:$0xff] }
  0x71   :  { %v259_v58 = vld [vmem:[%s2384_s1 + $0x778] sm:$0xff]  ;;  %v1438_v59 = vpack.c.bf16 %v227_v37, %v226_v55  ;;  %s1519_s1 = smov [#allocation2]  }
  0x72   :  { %1423 = vmatpush3.bf16.msra.mxu0 %v1422_v14  ;;  %v1470_v61 = vpack.c.bf16 %v259_v58, %v258_v60  ;;  %s928_s13 = sshll.u32 %s1519_s1, 4  ;;  %s929_s13 = int_to_ptr.vmem [resolvable:$true] %s928_s13 }
  0x73   :  { %1455 = vmatpush3.bf16.msra.mxu1 %v1454_v15  ;;  %1425 = vmatprep.subr.bf16.mxu0 %v1424_v16  ;;  %s1495_s14 = scalar_lea.vmem %s929_s13, 16  ;;  %s1499_s15 = scalar_lea.vmem %s929_s13, 32 }
  0x74   :  { %1457 = vmatprep.subr.bf16.mxu1 %v1456_v20  ;;  %p1496_p0 = scmp.ne.s32.totalorder %s929_s13, %s1495_s14  ;;  %p1500_p1 = scmp.lt.s32.totalorder %s929_s13, %s929_s13 }
  0x75   :  { %p1501_p2 = scmp.lt.s32.totalorder %s1499_s15, %s1495_s14 }
  0x76   :  { %1427 = vmatpush3.bf16.msra.mxu0 %v1426_v24 }
  0x77   :  { %1459 = vmatpush3.bf16.msra.mxu1 %v1458_v25  ;;  %1429 = vmatprep.subr.bf16.mxu0 %v1428_v26  ;;  %p1502_p3 = por %p1501_p2, %p1500_p1 }
  0x78   :  { %1461 = vmatprep.subr.bf16.mxu1 %v1460_v34 }
  0x79   :  { %p1503_p4 = pnand %p1502_p3, %p1496_p0 }
  0x7a   :  { %1431 = vmatpush3.bf16.msra.mxu0 %v1430_v42 }
  0x7b   :  { %1463 = vmatpush3.bf16.msra.mxu1 %v1462_v40  ;;  %1433 = vmatprep.subr.bf16.mxu0 %v1432_v43 }
  0x7c   :  { %1465 = vmatprep.subr.bf16.mxu1 %v1464_v47 }
  0x7e   :  { %1435 = vmatpush3.bf16.msra.mxu0 %v1434_v53 }
  0x7f   :  { %1467 = vmatpush3.bf16.msra.mxu1 %v1466_v54  ;;  %1437 = vmatprep.subr.bf16.mxu0 %v1436_v56 }
  0x80   :  { %1469 = vmatprep.subr.bf16.mxu1 %v1468_v57 }
  0x82   :  { %1439 = vmatpush3.bf16.msra.mxu0 %v1438_v59 }
  0x83   :  { %1471 = vmatpush3.bf16.msra.mxu1 %v1470_v61 }
  0x85   :  { %843 = vmatmul.mubr.f32.vlgmr.msra.gmra.mrb[6].mxu0 %v329_v62 }
  0x86   :  { %913 = vmatmul.mubr.f32.vlgmr.msra.gmra.mrb[6].mxu1 %v337_v63 }
  0xf8   :  { %v968_v0 = vpop.f32.mrb[0].mxu0 }
  0xf9   :  { %v1003_v1 = vpop.f32.mrb[0].mxu1  ;;  %v969_v2 = vpop.f32.mrb[1].mxu0 }
  0xfa   :  { %v970_v3 = vadd.f32 %v969_v2, %v968_v0  ;;  %v1004_v4 = vpop.f32.mrb[1].mxu1 }
  0xfb   :  { %v1005_v5 = vadd.f32 %v1004_v4, %v1003_v1 }
  0xfd   :  { %v495_v6 = vadd.f32 %v1005_v5, %v970_v3 }
 0x118   :  { %v1038_v7 = vpop.f32.mrb[2].mxu0 }
 0x119   :  { %v1039_v9 = vpop.f32.mrb[3].mxu0  ;;  %v1073_v10 = vpop.f32.mrb[2].mxu1 }
 0x11a   :  { %v1040_v11 = vadd.f32 %v1039_v9, %v1038_v7  ;;  %v1074_v27 = vpop.f32.mrb[3].mxu1 }
 0x11b   :  { %v1075_v12 = vadd.f32 %v1074_v27, %v1073_v10 }
 0x11c   :  { %v565_v14 = vadd.f32 %v1040_v11, %v495_v6 }
 0x11e   :  { %v635_v13 = vadd.f32 %v1075_v12, %v565_v14 }
 0x138   :  { %v1108_v15 = vpop.f32.mrb[4].mxu0 }
 0x139   :  { %v1109_v33 = vpop.f32.mrb[5].mxu0  ;;  %v1143_v8 = vpop.f32.mrb[4].mxu1 }
 0x13a   :  { %v1110_v16 = vadd.f32 %v1109_v33, %v1108_v15  ;;  %v1144_v17 = vpop.f32.mrb[5].mxu1 }
 0x13b   :  { %v1145_v18 = vadd.f32 %v1144_v17, %v1143_v8 }
 0x13c   :  { %v705_v19 = vadd.f32 %v1110_v16, %v635_v13 }
 0x13e   :  { %v775_v20 = vadd.f32 %v1145_v18, %v705_v19 }
 0x158   :  { %v1178_v21 = vpop.f32.mrb[6].mxu0 }
 0x159   :  { %v1179_v22 = vpop.f32.mrb[7].mxu0  ;;  %v1213_v28 = vpop.f32.mrb[6].mxu1 }
 0x15a   :  { %v1180_v29 = vadd.f32 %v1179_v22, %v1178_v21  ;;  %v1214_v23 = vpop.f32.mrb[7].mxu1 }
 0x15b   :  { %v1215_v24 = vadd.f32 %v1214_v23, %v1213_v28 }
 0x15c   :  { %v845_v25 = vadd.f32 %v1180_v29, %v775_v20 }
 0x15e   :  { %v915_v26 = vadd.f32 %v1215_v24, %v845_v25 }
 0x160   :  { %v918_v30 = vmul.f32 0.00390625, %v915_v26 }
 0x162   :  { %v1474_v31 = vand.u32 2147483647, %v918_v30  ;;  %v1478_v35 = vand.u32 2147483648, %v918_v30  ;;  %vm1473_vm2 = vcmp.lt.f32.partialorder %v918_v30, 0.0  ;;  %vm1472_vm3 = vcmp.eq.f32.partialorder %v918_v30, 0.0 }
 0x164   :  { %1491 = vlog2.f32 %v1474_v31  ;;  %vm1482_vm0 = vweird.f32 %v1474_v31  ;;  %vm1484_vm1 = vcmp.eq.f32.partialorder %v1474_v31, 0.0  ;;  %vm1475_vm5 = vcmp.eq.f32.partialorder %v1474_v31, inf }
 0x16e   :  { %v1492_v32 = vpop.eup %1491 }
 0x16f   :  { %v1479_v34 = vmul.f32 0.33333334, %v1492_v32 }
 0x171   :  { %1493 = vpow2.f32 %v1479_v34 }
 0x17b   :  { %v1494_v36 = vpop.eup %1493 }
 0x17c   :  { %v1481_v38 = vor.u32 %v1494_v36, %v1478_v35 }
 0x17e   :  { %v1483_v39 = vsel %vm1482_vm0, %v918_v30, %v1481_v38 }
 0x17f   :  { %v1486_v41 = vsel %vm1484_vm1, %v1478_v35, %v1483_v39 }
 0x180   :  { %v1487_v42 = vsel %vm1473_vm2, nan, %v1486_v41 }
 0x181   :  { %v1488_v40 = vsel %vm1472_vm3, 0.0, %v1487_v42 }
 0x182   :  { %v1489_v43 = vsel %vm1475_vm5, inf, %v1488_v40 }
 0x183   :  { %921 = vst.msk [vmem:[#allocation2] sm:$0x1] %vm920_vm4, %v1489_v43 }
 0x184   :  { %1506 = shalt.err (!%p1503_p4)
}
 0x185   :  { %s1507_s18 = scalar_lea.hbm %s2385_s2, 16 }
 0x186   :  { %p1508_p5 = scmp.ne.s32.totalorder %s2385_s2, %s1507_s18  ;;  %p1511_p6 = scmp.lt.u32.totalorder %s1507_s18, %s2385_s2 }
 0x188   :  { %p1513_p7 = pnand %p1511_p6, %p1508_p5 }
 0x18a   :  { %1516 = shalt.err (!%p1513_p7)
}
 0x18b   :  { %931 = dma.vmem_to_hbm [thread:$0]  %s929_s13, 16, %s2385_s2, [#allocation3]  }
 0x18c   :  { %1517 = dma.done.wait [#allocation3], 16  }
 0x18d   :  { %1518 = vsyncadd [#allocation3], 4294967280 }
 0x18e   :  { %935 = vsyncpa [#allocation3], 1 }

</bundles_post_ra>
